<compile_context>
chip_gen: v5e
topology: v5e:2x2
jax: 0.10.0
libtpu: 0.0.40
codegen_flags: <defaults>
</compile_context>

<pallas_src>
import functools

import jax
import jax.numpy as jnp
from jax.experimental import pallas as pl
from jax.experimental.pallas import tpu as pltpu


def session2emb_kernel(
    first_tile_ref,  # [num_sb] int32 (SMEM prefetch): first node tile of this session tile
    count_ref,       # [num_sb] int32 (SMEM prefetch): number of node tiles it touches
    brow_ref,        # [1, tile_n]  int32  session id per node
    x_ref,           # [tile_n, H]  bf16   node embeddings
    vnw1_ref,        # [tile_b, H]  bf16   precomputed v_n @ W1^T
    w2t_ref,         # [H, H]       bf16   W_2^T
    b12_ref,         # [1, H]       f32    b_1 + b_2 (folded)
    qw_ref,          # [1, H]       f32    q weight
    qb_ref,          # [1, 1]       f32    q bias (SMEM scalar)
    w3bt_ref,        # [H, H]       bf16   W_3[:, H:]^T
    vnw3_ref,        # [tile_b, H]  f32    precomputed v_n @ W_3[:, :H]^T + b_3
    out_ref,         # [tile_b, H]  f32
    acc_ref,         # [tile_b, H]  f32 scratch: running s_g
):
    b = pl.program_id(0)
    n = pl.program_id(1)
    tile_b = acc_ref.shape[0]

    @pl.when(n == 0)
    def _init():
        acc_ref[...] = jnp.zeros_like(acc_ref)

    # Only node tiles intersecting this session tile's contiguous node range contribute
    # (batch is sorted). The index maps clamp the block index for the skipped steps, so
    # they also re-use the already-resident x tile (no DMA) — only loop overhead remains.
    @pl.when(n < count_ref[b])
    def _accumulate():
        x = x_ref[...]                                                   # bf16 [tile_n, H]
        b0 = b * tile_b

        # Single per-tile session one-hot, built on the VPU from int32 ids.
        seg_bn = (brow_ref[...] == b0 + jax.lax.broadcasted_iota(
            jnp.int32, (tile_b, x.shape[0]), 0)).astype(jnp.bfloat16)    # [tile_b, tile_n]

        # Broadcast hoisted v_n @ W1^T to nodes: seg_bn^T @ vn_w1 (transposed-LHS contraction).
        w1_branch = jax.lax.dot_general(
            seg_bn, vnw1_ref[...],
            dimension_numbers=(((0,), (0,)), ((), ())),
            preferred_element_type=jnp.float32)                          # [tile_n, H]

        h = jax.nn.sigmoid(
            w1_branch
            + jnp.dot(x, w2t_ref[...], preferred_element_type=jnp.float32)
            + b12_ref[...])                                              # f32 [tile_n, H]

        # alpha = q(h): VPU multiply + cross-lane reduce (no width-1 MXU matmul).
        # Padded hidden lanes of h are sigmoid(0) = 0.5, but qw is zero-padded there, so
        # they never pollute alpha — keep qw zero-padded if the padding scheme changes.
        alpha = jnp.sum(h * qw_ref[...], axis=-1, keepdims=True) + qb_ref[0, 0]  # [tile_n, 1]

        # Segment-sum of alpha-weighted node embeddings into the resident accumulator.
        wx = alpha.astype(jnp.bfloat16) * x                              # single bf16 VALU pass
        acc_ref[...] += jnp.dot(seg_bn, wx, preferred_element_type=jnp.float32)

    @pl.when(n == pl.num_programs(1) - 1)
    def _finalize():
        out_ref[...] = vnw3_ref[...] + jnp.dot(
            acc_ref[...].astype(jnp.bfloat16), w3bt_ref[...],
            preferred_element_type=jnp.float32)


def _round_up(a, m):
    return -(-a // m) * m


def _pad2d(a, rows, cols):
    return jnp.pad(a, ((0, rows - a.shape[0]), (0, cols - a.shape[1])))


@functools.partial(jax.jit, static_argnums=(3,))
def session2embedding(session_embedding, batch, params, num_sessions):
    """session_embedding: [N, H] f32; batch: [N] sorted int session ids; num_sessions static."""
    N, H = session_embedding.shape
    B = num_sessions
    batch = batch.astype(jnp.int32)

    LANE, SUB = 128, 8
    H_pad = _round_up(H, LANE)

    # --- session (output) tiling: bounded tile_b, >= 2 grid programs whenever B allows ---
    B_pad = _round_up(B, SUB)
    if B_pad <= SUB:
        tile_b = B_pad                          # tiny batch: single session tile
    elif B_pad <= 2 * 256:
        tile_b = _round_up(B_pad // 2, SUB)     # exactly two tiles -> both v7x cores busy
        B_pad = 2 * tile_b
    else:
        tile_b = 256                            # cap acc/out/one-hot footprint
        B_pad = _round_up(B_pad, tile_b)
    num_sb = B_pad // tile_b

    # --- node (reduction) tiling ---
    # TODO(synk): per-generation sweep (v6e/v5e like 1024-2048, v7x 512-1024); 1024 fits
    # comfortably everywhere at H_pad=128 with the explicit vmem limit below.
    tile_n = 1024 if N > 1024 else _round_up(N, LANE)
    N_pad = _round_up(N, tile_n)

    # ---- plain-JAX glue (O(B*H + N)), fully jitted, no host syncs ----
    counts = jnp.bincount(batch, length=B)                                      # [B]
    # Last node per session. NOTE: empty sessions get v_n = 0 here (robust), whereas the
    # cumsum/torch.split reference would point at the previous session's last node.
    last_idx = jax.ops.segment_max(jnp.arange(N, dtype=jnp.int32), batch,
                                   num_segments=B)
    safe_last = jnp.clip(last_idx, 0, N - 1)
    v_n = jnp.where((counts > 0)[:, None], session_embedding[safe_last], 0.0)   # [B, H] f32

    # Hoisted loop-invariant per-session matmuls (done once, in f32, outside the kernel).
    vn_w1 = v_n @ params["w1"].T                                                # [B, H]
    vn_w3 = v_n @ params["w3"][:, :H].T + params["b3"][None, :]                 # [B, H]

    batch_ids = jnp.full((N_pad,), B_pad, dtype=jnp.int32).at[:N].set(batch)
    batch_row = batch_ids.reshape(1, N_pad)

    # Per-session-tile node-tile ranges (batch sorted -> sessions contiguous in node axis).
    sb_lo = jnp.arange(num_sb, dtype=jnp.int32) * tile_b
    node_start = jnp.searchsorted(batch, sb_lo, side="left").astype(jnp.int32)
    node_end = jnp.searchsorted(batch, sb_lo + tile_b, side="left").astype(jnp.int32)
    has_nodes = node_end > node_start
    first_tile = jnp.where(has_nodes, node_start // tile_n, 0).astype(jnp.int32)
    n_node_tiles = jnp.where(
        has_nodes, (node_end - 1) // tile_n - node_start // tile_n + 1, 0).astype(jnp.int32)

    # MXU operands: 128-lane-padded, pre-transposed, bf16. Biases / q / finalize add: f32.
    x_p = _pad2d(session_embedding, N_pad, H_pad).astype(jnp.bfloat16)
    vnw1_p = _pad2d(vn_w1, B_pad, H_pad).astype(jnp.bfloat16)
    vnw3_p = _pad2d(vn_w3, B_pad, H_pad)                                        # f32
    w2t = _pad2d(params["w2"].T, H_pad, H_pad).astype(jnp.bfloat16)
    w3bt = _pad2d(params["w3"][:, H:].T, H_pad, H_pad).astype(jnp.bfloat16)
    b12 = _pad2d((params["b1"] + params["b2"]).reshape(1, H), 1, H_pad)
    qw = _pad2d(params["qw"].reshape(1, H), 1, H_pad)
    qb = params["qb"].reshape(1, 1).astype(jnp.float32)

    # Explicit VMEM budget (double-buffered blocks + scratch) with headroom; matters on
    # v5e (16 MiB scoped default) and v7x (64 MiB physical VMEM).
    blk_bytes = (
        tile_n * H_pad * 2          # x tile (bf16)
        + tile_n * 4                # batch ids (int32)
        + tile_b * H_pad * 2        # vn_w1 tile (bf16)
        + tile_b * H_pad * 4        # vn_w3 tile (f32)
        + 2 * H_pad * H_pad * 2     # W2^T + W3b^T (bf16)
        + 3 * H_pad * 4             # biases / q row (f32)
        + tile_b * H_pad * 4        # out tile (f32)
    )
    vmem_limit = int(min(48 << 20, max(32 << 20, 4 * blk_bytes + tile_b * H_pad * 4)))

    grid_spec = pltpu.PrefetchScalarGridSpec(
        num_scalar_prefetch=2,
        grid=(num_sb, N_pad // tile_n),
        in_specs=[
            # batch ids + x follow this session tile's own node range (clamped so skipped
            # steps re-use the resident tile and Pallas elides the DMA).
            pl.BlockSpec(
                (1, tile_n),
                lambda b, n, ft, cnt: (0, ft[b] + jnp.minimum(n, jnp.maximum(cnt[b] - 1, 0)))),
            pl.BlockSpec(
                (tile_n, H_pad),
                lambda b, n, ft, cnt: (ft[b] + jnp.minimum(n, jnp.maximum(cnt[b] - 1, 0)), 0)),
            pl.BlockSpec((tile_b, H_pad), lambda b, n, ft, cnt: (b, 0)),    # vn_w1
            pl.BlockSpec((H_pad, H_pad), lambda b, n, ft, cnt: (0, 0)),     # W2^T (resident)
            pl.BlockSpec((1, H_pad), lambda b, n, ft, cnt: (0, 0)),         # b1 + b2
            pl.BlockSpec((1, H_pad), lambda b, n, ft, cnt: (0, 0)),         # q weight
            pl.BlockSpec((1, 1), lambda b, n, ft, cnt: (0, 0),
                         memory_space=pltpu.MemorySpace.SMEM),              # q bias scalar
            pl.BlockSpec((H_pad, H_pad), lambda b, n, ft, cnt: (0, 0)),     # W3b^T (resident)
            pl.BlockSpec((tile_b, H_pad), lambda b, n, ft, cnt: (b, 0)),    # vn_w3 (+ b3)
        ],
        out_specs=pl.BlockSpec((tile_b, H_pad), lambda b, n, ft, cnt: (b, 0)),
        scratch_shapes=[pltpu.VMEM((tile_b, H_pad), jnp.float32)],
    )

    out_p = pl.pallas_call(
        session2emb_kernel,
        out_shape=jax.ShapeDtypeStruct((B_pad, H_pad), jnp.float32),
        grid_spec=grid_spec,
        compiler_params=pltpu.CompilerParams(
            dimension_semantics=("parallel", "arbitrary"),
            vmem_limit_bytes=vmem_limit),
    )(first_tile, n_node_tiles, batch_row, x_p, vnw1_p, w2t, b12, qw, qb, w3bt, vnw3_p)

    return out_p[:B, :H]


def reference(session_embedding, batch, params, num_sessions):
    """Pure-JAX f32 reference replicating the PyTorch forward (torch.split semantics)."""
    sections = jnp.bincount(batch, length=num_sessions)
    last_idx = jnp.cumsum(sections) - 1
    v_n_repeat = session_embedding[last_idx[batch]]

    lin = lambda x, w, b: x @ w.T + b
    alpha = lin(
        jax.nn.sigmoid(
            lin(v_n_repeat, params["w1"], params["b1"])
            + lin(session_embedding, params["w2"], params["b2"])),
        params["qw"], params["qb"])
    s_g = jax.ops.segment_sum(alpha * session_embedding, batch, num_segments=num_sessions)
    v_n = session_embedding[last_idx]
    return lin(jnp.concatenate([v_n, s_g], axis=1), params["w3"], params["b3"])


if __name__ == "__main__":
    H = 32          # hidden_size
    N = 8           # total nodes across all sessions in the batch
    B = 2           # number of sessions

    key = jax.random.PRNGKey(0)
    keys = jax.random.split(key, 10)

    # Deterministic synthetic parameters (nn.Linear shapes: weight [out, in], bias [out]).
    scale = 1.0 / jnp.sqrt(H)
    scale3 = 1.0 / jnp.sqrt(2 * H)
    params = {
        "w1": jax.random.uniform(keys[0], (H, H), jnp.float32, -scale, scale),
        "b1": jax.random.uniform(keys[1], (H,), jnp.float32, -scale, scale),
        "w2": jax.random.uniform(keys[2], (H, H), jnp.float32, -scale, scale),
        "b2": jax.random.uniform(keys[3], (H,), jnp.float32, -scale, scale),
        "qw": jax.random.uniform(keys[4], (1, H), jnp.float32, -scale, scale),   # q.weight [1, H]
        "qb": jax.random.uniform(keys[5], (1,), jnp.float32, -scale, scale),
        "w3": jax.random.uniform(keys[6], (H, 2 * H), jnp.float32, -scale3, scale3),
        "b3": jax.random.uniform(keys[7], (H,), jnp.float32, -scale3, scale3),
    }

    session_embedding = jax.random.normal(keys[8], (N, H), jnp.float32)
    # batch ids must be sorted (torch.split semantics): sessions of length 3 and 5.
    batch = jnp.array([0, 0, 0, 1, 1, 1, 1, 1], dtype=jnp.int32)

    out = session2embedding(session_embedding, batch, params, B)
    out = jax.block_until_ready(out)

    ref = reference(session_embedding, batch, params, B)
    assert out.shape == (B, H)
    # bf16 MXU operands (f32 accumulation kept) -> loosened tolerance vs pure-f32 reference.
    assert jnp.allclose(out, ref, atol=5e-2, rtol=5e-2), "Pallas kernel mismatch vs reference"

    print("KERNEL_OK")
</pallas_src>

<mosaic_0001>
module attributes {stable_mosaic.version = 11 : i64} {
  func.func @session2emb_kernel(%arg0: i32, %arg1: i32, %arg2: memref<1xi32, #tpu.memory_space<smem>>, %arg3: memref<1xi32, #tpu.memory_space<smem>>, %arg4: memref<1x128xi32, #tpu.memory_space<vmem>>, %arg5: memref<128x128xbf16, #tpu.memory_space<vmem>>, %arg6: memref<8x128xbf16, #tpu.memory_space<vmem>>, %arg7: memref<128x128xbf16, #tpu.memory_space<vmem>>, %arg8: memref<1x128xf32, #tpu.memory_space<vmem>>, %arg9: memref<1x128xf32, #tpu.memory_space<vmem>>, %arg10: memref<1x1xf32, #tpu.memory_space<smem>>, %arg11: memref<128x128xbf16, #tpu.memory_space<vmem>>, %arg12: memref<8x128xf32, #tpu.memory_space<vmem>>, %arg13: memref<8x128xf32, #tpu.memory_space<vmem>>, %arg14: memref<8x128xf32, #tpu.memory_space<vmem>>) attributes {dimension_semantics = [#tpu.dimension_semantics<parallel>, #tpu.dimension_semantics<arbitrary>], iteration_bounds = array<i64: 1, 1>, scalar_prefetch = 2 : i64, scratch_operands = 1 : i64, tpu.core_type = #tpu.core_type<tc>, window_params = [{transform_indices = @transform_0, window_bounds = array<i64: 1, 128>}, {transform_indices = @transform_1, window_bounds = array<i64: 128, 128>}, {transform_indices = @transform_2, window_bounds = array<i64: 8, 128>}, {pipeline_mode = #tpu.pipeline_mode<synchronous>, transform_indices = @transform_3, window_bounds = array<i64: 128, 128>}, {pipeline_mode = #tpu.pipeline_mode<synchronous>, transform_indices = @transform_4, window_bounds = array<i64: 1, 128>}, {pipeline_mode = #tpu.pipeline_mode<synchronous>, transform_indices = @transform_5, window_bounds = array<i64: 1, 128>}, {transform_indices = @transform_6, window_bounds = array<i64: 1, 1>}, {pipeline_mode = #tpu.pipeline_mode<synchronous>, transform_indices = @transform_7, window_bounds = array<i64: 128, 128>}, {transform_indices = @transform_8, window_bounds = array<i64: 8, 128>}, {transform_indices = @transform_9, window_bounds = array<i64: 8, 128>}]} {
    %c0_i32 = arith.constant 0 : i32
    %0 = arith.cmpi eq, %arg1, %c0_i32 : i32
    %1 = arith.extui %0 : i1 to i32
    %c0_i32_0 = arith.constant 0 : i32
    %2 = arith.cmpi ne, %1, %c0_i32_0 : i32
    scf.if %2 {
      %cst = arith.constant 0.000000e+00 : f32
      %11 = vector.broadcast %cst : f32 to vector<8x128xf32>
      %c0 = arith.constant 0 : index
      %c0_4 = arith.constant 0 : index
      %12 = vector.load %arg14[%c0, %c0_4] : memref<8x128xf32, #tpu.memory_space<vmem>>, vector<8x128xf32>
      tpu.vector_store %arg14[%c0, %c0_4], %11 {strides = array<i32>} : memref<8x128xf32, #tpu.memory_space<vmem>>, vector<8x128xf32>,
    } else {
    }
    %3 = arith.index_cast %arg0 : i32 to index
    %4 = memref.load %arg3[%3] : memref<1xi32, #tpu.memory_space<smem>>
    %5 = arith.cmpi slt, %arg1, %4 : i32
    %6 = arith.extui %5 : i1 to i32
    %c0_i32_1 = arith.constant 0 : i32
    %7 = arith.cmpi ne, %6, %c0_i32_1 : i32
    scf.if %7 {
      %c0 = arith.constant 0 : index
      %c0_4 = arith.constant 0 : index
      %11 = vector.load %arg5[%c0, %c0_4] : memref<128x128xbf16, #tpu.memory_space<vmem>>, vector<128x128xbf16>
      %c8_i32 = arith.constant 8 : i32
      %12 = arith.muli %arg0, %c8_i32 : i32
      %c0_5 = arith.constant 0 : index
      %c0_6 = arith.constant 0 : index
      %13 = vector.load %arg4[%c0_5, %c0_6] : memref<1x128xi32, #tpu.memory_space<vmem>>, vector<1x128xi32>
      %14 = tpu.iota {dimensions = array<i32: 0>} : vector<8x128xi32>
      %15 = vector.broadcast %12 : i32 to vector<8x128xi32>
      %16 = arith.addi %15, %14 : vector<8x128xi32>
      %17 = vector.broadcast %13 : vector<1x128xi32> to vector<8x128xi32>
      %18 = arith.cmpi eq, %17, %16 : vector<8x128xi32>
      %19 = arith.extui %18 : vector<8x128xi1> to vector<8x128xi32>
      %20 = arith.sitofp %19 : vector<8x128xi32> to vector<8x128xf32>
      %21 = arith.truncf %20 : vector<8x128xf32> to vector<8x128xbf16>
      %c0_7 = arith.constant 0 : index
      %c0_8 = arith.constant 0 : index
      %22 = vector.load %arg6[%c0_7, %c0_8] : memref<8x128xbf16, #tpu.memory_space<vmem>>, vector<8x128xbf16>
      %cst = arith.constant dense<0.000000e+00> : vector<128x128xf32>
      %23 = tpu.matmul %21, %22, %cst {dimension_numbers = #tpu.dot_dimension_numbers<[0], [0], [1], [1], [0, 1, 1, 1], [], []>} : vector<8x128xbf16>, vector<8x128xbf16>, vector<128x128xf32> -> vector<128x128xf32>
      %c0_9 = arith.constant 0 : index
      %c0_10 = arith.constant 0 : index
      %24 = vector.load %arg7[%c0_9, %c0_10] : memref<128x128xbf16, #tpu.memory_space<vmem>>, vector<128x128xbf16>
      %cst_11 = arith.constant dense<0.000000e+00> : vector<128x128xf32>
      %25 = tpu.matmul %11, %24, %cst_11 {dimension_numbers = #tpu.dot_dimension_numbers<[1], [0], [0], [1], [0, 0, 1, 1], [], []>} : vector<128x128xbf16>, vector<128x128xbf16>, vector<128x128xf32> -> vector<128x128xf32>
      %26 = arith.addf %23, %25 : vector<128x128xf32>
      %c0_12 = arith.constant 0 : index
      %c0_13 = arith.constant 0 : index
      %27 = vector.load %arg8[%c0_12, %c0_13] : memref<1x128xf32, #tpu.memory_space<vmem>>, vector<1x128xf32>
      %28 = vector.broadcast %27 : vector<1x128xf32> to vector<128x128xf32>
      %29 = arith.addf %26, %28 : vector<128x128xf32>
      %30 = arith.negf %29 : vector<128x128xf32>
      %31 = math.exp %30 : vector<128x128xf32>
      %cst_14 = arith.constant 1.000000e+00 : f32
      %32 = vector.broadcast %cst_14 : f32 to vector<128x128xf32>
      %33 = arith.addf %32, %31 : vector<128x128xf32>
      %34 = arith.divf %32, %33 : vector<128x128xf32>
      %c0_15 = arith.constant 0 : index
      %c0_16 = arith.constant 0 : index
      %35 = vector.load %arg9[%c0_15, %c0_16] : memref<1x128xf32, #tpu.memory_space<vmem>>, vector<1x128xf32>
      %36 = vector.broadcast %35 : vector<1x128xf32> to vector<128x128xf32>
      %37 = arith.mulf %34, %36 : vector<128x128xf32>
      %cst_17 = arith.constant dense<0.000000e+00> : vector<128xf32>
      %38 = vector.multi_reduction <add>, %37, %cst_17 [1] : vector<128x128xf32> to vector<128xf32>
      %39 = vector.shape_cast %38 : vector<128xf32> to vector<128x1xf32>
      %c0_18 = arith.constant 0 : index
      %c0_19 = arith.constant 0 : index
      %40 = memref.load %arg10[%c0_18, %c0_19] : memref<1x1xf32, #tpu.memory_space<smem>>
      %41 = vector.broadcast %40 : f32 to vector<128x1xf32>
      %42 = arith.addf %39, %41 : vector<128x1xf32>
      %43 = arith.truncf %42 : vector<128x1xf32> to vector<128x1xbf16>
      %44 = vector.broadcast %43 : vector<128x1xbf16> to vector<128x128xbf16>
      %45 = arith.mulf %44, %11 : vector<128x128xbf16>
      %c0_20 = arith.constant 0 : index
      %c0_21 = arith.constant 0 : index
      %46 = vector.load %arg14[%c0_20, %c0_21] : memref<8x128xf32, #tpu.memory_space<vmem>>, vector<8x128xf32>
      %cst_22 = arith.constant dense<0.000000e+00> : vector<8x128xf32>
      %47 = tpu.matmul %21, %45, %cst_22 {dimension_numbers = #tpu.dot_dimension_numbers<[1], [0], [0], [1], [0, 0, 1, 1], [], []>} : vector<8x128xbf16>, vector<128x128xbf16>, vector<8x128xf32> -> vector<8x128xf32>
      %48 = arith.addf %46, %47 : vector<8x128xf32>
      %c0_23 = arith.constant 0 : index
      %c0_24 = arith.constant 0 : index
      %49 = vector.load %arg14[%c0_23, %c0_24] : memref<8x128xf32, #tpu.memory_space<vmem>>, vector<8x128xf32>
      tpu.vector_store %arg14[%c0_23, %c0_24], %48 {strides = array<i32>} : memref<8x128xf32, #tpu.memory_space<vmem>>, vector<8x128xf32>,
    } else {
    }
    %c0_i32_2 = arith.constant 0 : i32
    %8 = arith.cmpi eq, %arg1, %c0_i32_2 : i32
    %9 = arith.extui %8 : i1 to i32
    %c0_i32_3 = arith.constant 0 : i32
    %10 = arith.cmpi ne, %9, %c0_i32_3 : i32
    scf.if %10 {
      %c0 = arith.constant 0 : index
      %c0_4 = arith.constant 0 : index
      %11 = vector.load %arg12[%c0, %c0_4] : memref<8x128xf32, #tpu.memory_space<vmem>>, vector<8x128xf32>
      %c0_5 = arith.constant 0 : index
      %c0_6 = arith.constant 0 : index
      %12 = vector.load %arg14[%c0_5, %c0_6] : memref<8x128xf32, #tpu.memory_space<vmem>>, vector<8x128xf32>
      %13 = arith.truncf %12 : vector<8x128xf32> to vector<8x128xbf16>
      %c0_7 = arith.constant 0 : index
      %c0_8 = arith.constant 0 : index
      %14 = vector.load %arg11[%c0_7, %c0_8] : memref<128x128xbf16, #tpu.memory_space<vmem>>, vector<128x128xbf16>
      %cst = arith.constant dense<0.000000e+00> : vector<8x128xf32>
      %15 = tpu.matmul %13, %14, %cst {dimension_numbers = #tpu.dot_dimension_numbers<[1], [0], [0], [1], [0, 0, 1, 1], [], []>} : vector<8x128xbf16>, vector<128x128xbf16>, vector<8x128xf32> -> vector<8x128xf32>
      %16 = arith.addf %11, %15 : vector<8x128xf32>
      %c0_9 = arith.constant 0 : index
      %c0_10 = arith.constant 0 : index
      %17 = vector.load %arg13[%c0_9, %c0_10] : memref<8x128xf32, #tpu.memory_space<vmem>>, vector<8x128xf32>
      tpu.vector_store %arg13[%c0_9, %c0_10], %16 {strides = array<i32>} : memref<8x128xf32, #tpu.memory_space<vmem>>, vector<8x128xf32>,
    } else {
    }
    return
  }
  func.func @transform_0(%arg0: i32, %arg1: i32, %arg2: memref<1xi32, #tpu.memory_space<smem>>, %arg3: memref<1xi32, #tpu.memory_space<smem>>) -> (i32, i32) {
    %0 = arith.index_cast %arg0 : i32 to index
    %1 = memref.load %arg2[%0] : memref<1xi32, #tpu.memory_space<smem>>
    %2 = arith.index_cast %arg0 : i32 to index
    %3 = memref.load %arg3[%2] : memref<1xi32, #tpu.memory_space<smem>>
    %c1_i32 = arith.constant 1 : i32
    %4 = arith.subi %3, %c1_i32 : i32
    %c0_i32 = arith.constant 0 : i32
    %5 = arith.maxsi %4, %c0_i32 : i32
    %6 = arith.minsi %arg1, %5 : i32
    %7 = arith.addi %1, %6 : i32
    %c0_i32_0 = arith.constant 0 : i32
    %c0_i32_1 = arith.constant 0 : i32
    return %c0_i32_0, %7 : i32, i32
  }
  func.func @transform_1(%arg0: i32, %arg1: i32, %arg2: memref<1xi32, #tpu.memory_space<smem>>, %arg3: memref<1xi32, #tpu.memory_space<smem>>) -> (i32, i32) {
    %0 = arith.index_cast %arg0 : i32 to index
    %1 = memref.load %arg2[%0] : memref<1xi32, #tpu.memory_space<smem>>
    %2 = arith.index_cast %arg0 : i32 to index
    %3 = memref.load %arg3[%2] : memref<1xi32, #tpu.memory_space<smem>>
    %c1_i32 = arith.constant 1 : i32
    %4 = arith.subi %3, %c1_i32 : i32
    %c0_i32 = arith.constant 0 : i32
    %5 = arith.maxsi %4, %c0_i32 : i32
    %6 = arith.minsi %arg1, %5 : i32
    %7 = arith.addi %1, %6 : i32
    %c0_i32_0 = arith.constant 0 : i32
    %c0_i32_1 = arith.constant 0 : i32
    return %7, %c0_i32_0 : i32, i32
  }
  func.func @transform_2(%arg0: i32, %arg1: i32, %arg2: memref<1xi32, #tpu.memory_space<smem>>, %arg3: memref<1xi32, #tpu.memory_space<smem>>) -> (i32, i32) {
    %c0_i32 = arith.constant 0 : i32
    %c0_i32_0 = arith.constant 0 : i32
    return %arg0, %c0_i32 : i32, i32
  }
  func.func @transform_3(%arg0: i32, %arg1: i32, %arg2: memref<1xi32, #tpu.memory_space<smem>>, %arg3: memref<1xi32, #tpu.memory_space<smem>>) -> (i32, i32) {
    %c0_i32 = arith.constant 0 : i32
    %c0_i32_0 = arith.constant 0 : i32
    %c0_i32_1 = arith.constant 0 : i32
    return %c0_i32, %c0_i32_0 : i32, i32
  }
  func.func @transform_4(%arg0: i32, %arg1: i32, %arg2: memref<1xi32, #tpu.memory_space<smem>>, %arg3: memref<1xi32, #tpu.memory_space<smem>>) -> (i32, i32) {
    %c0_i32 = arith.constant 0 : i32
    %c0_i32_0 = arith.constant 0 : i32
    %c0_i32_1 = arith.constant 0 : i32
    return %c0_i32, %c0_i32_0 : i32, i32
  }
  func.func @transform_5(%arg0: i32, %arg1: i32, %arg2: memref<1xi32, #tpu.memory_space<smem>>, %arg3: memref<1xi32, #tpu.memory_space<smem>>) -> (i32, i32) {
    %c0_i32 = arith.constant 0 : i32
    %c0_i32_0 = arith.constant 0 : i32
    %c0_i32_1 = arith.constant 0 : i32
    return %c0_i32, %c0_i32_0 : i32, i32
  }
  func.func @transform_6(%arg0: i32, %arg1: i32, %arg2: memref<1xi32, #tpu.memory_space<smem>>, %arg3: memref<1xi32, #tpu.memory_space<smem>>) -> (i32, i32) {
    %c0_i32 = arith.constant 0 : i32
    %c0_i32_0 = arith.constant 0 : i32
    %c0_i32_1 = arith.constant 0 : i32
    return %c0_i32, %c0_i32_0 : i32, i32
  }
  func.func @transform_7(%arg0: i32, %arg1: i32, %arg2: memref<1xi32, #tpu.memory_space<smem>>, %arg3: memref<1xi32, #tpu.memory_space<smem>>) -> (i32, i32) {
    %c0_i32 = arith.constant 0 : i32
    %c0_i32_0 = arith.constant 0 : i32
    %c0_i32_1 = arith.constant 0 : i32
    return %c0_i32, %c0_i32_0 : i32, i32
  }
  func.func @transform_8(%arg0: i32, %arg1: i32, %arg2: memref<1xi32, #tpu.memory_space<smem>>, %arg3: memref<1xi32, #tpu.memory_space<smem>>) -> (i32, i32) {
    %c0_i32 = arith.constant 0 : i32
    %c0_i32_0 = arith.constant 0 : i32
    return %arg0, %c0_i32 : i32, i32
  }
  func.func @transform_9(%arg0: i32, %arg1: i32, %arg2: memref<1xi32, #tpu.memory_space<smem>>, %arg3: memref<1xi32, #tpu.memory_space<smem>>) -> (i32, i32) {
    %c0_i32 = arith.constant 0 : i32
    %c0_i32_0 = arith.constant 0 : i32
    return %arg0, %c0_i32 : i32, i32
  }
}

</mosaic_0001>

<bundles_post_ra>
// kernel: session2embedding.1
= control target key start
LH: loop header
LB: loop body
LE: loop exit
PB: predicated region body
PF: predicated region fallthrough
CT: control target
= control target key end

     0   :  { %v1258_v0 = vmov 0.0   ;;  %s1804_s1 = inlined_call_operand.<no memory space> [shape: s32[1], index: 1, kind: input, shape index: {}]   ;;  %s1805_s4 = inlined_call_operand.vmem [shape: bf16[8,128], index: 4, kind: input, shape index: {}]   ;;  %s1806_s5 = inlined_call_operand.vmem [shape: bf16[128,128], index: 5, kind: input, shape index: {}]   ;;  %s1807_s6 = inlined_call_operand.vmem [shape: f32[1,128], index: 6, kind: input, shape index: {}]   ;;  %s1808_s7 = inlined_call_operand.vmem [shape: f32[1,128], index: 7, kind: input, shape index: {}]   ;;  %s1809_s8 = inlined_call_operand.<no memory space> [shape: f32[1,1], index: 8, kind: input, shape index: {}]   ;;  %s1810_s9 = inlined_call_operand.vmem [shape: bf16[128,128], index: 9, kind: input, shape index: {}]   ;;  %s1811_s10 = inlined_call_operand.vmem [shape: f32[8,128], index: 10, kind: input, shape index: {}]   ;;  %s1812_s11 = inlined_call_operand.vmem [shape: f32[8,128], index: 11, kind: output, shape index: {}]   ;;  %s1813_s0 = inlined_call_operand.<no memory space> [shape: s32[1], index: 0, kind: input, shape index: {}]   ;;  %s1814_s2 = inlined_call_operand.vmem [shape: s32[1,128], index: 2, kind: input, shape index: {}]   ;;  %s1815_s3 = inlined_call_operand.vmem [shape: bf16[128,128], index: 3, kind: input, shape index: {}]  }
   0x1   :  { %18 = sst [smem:[#allocation6]] %s1809_s8  ;;  %s1017_s21 = sadd.s32 4294967295, %s1804_s1  ;;  %148 = vst [vmem:[#allocation2] sm:$0xff] %v1258_v0 }
   0x2   :  { %p105_p0 = scmp.gt.s32.totalorder %s1017_s21, 0  ;;  %p1024_p3 = scmp.le.s32.totalorder %s1804_s1, 0 }
   0x4   :  { %s1843_s21 = smov (!%p105_p0, %s1017_s21), 0 }
   0x5   :  { %s1845_s21 = smov (%p105_p0, %s1843_s21), 0 }
   0x6   :  { %s109_s24 = sadd.s32 %s1845_s21, %s1813_s0 }
   0x7   :  { %p110_p1 = scmp.lt.s32.totalorder %s109_s24, 0  ;;  %s1021_s25 = sshll.u32 %s109_s24, 4 }
   0x8   :  { %p130_p2 = scmp.lt.s32.totalorder %s1021_s25, 15  ;;  %153 = sbr.rel (%p1024_p3) target bundleno = 781 (0x30d), region = 45 }
   0x9   :  { %s1847_s24 = smov (!%p110_p1, %s109_s24), 0 }
   0xa   :  { %s1849_s25 = smov (!%p130_p2, %s1021_s25), 15  ;;  %s112_s27 = scalar_lea.vmem %s1814_s2, %s1847_s24 }
   0xb   :  { %s1022_s28 = sshll.u32 %s1849_s25, 2 }
   0xc   :  { %s1336_s12 = scalar_lea.vmem %s1815_s3, %s1022_s28 }
   0xd   :  { %v172_v1 = vlaneseq  ;;  %v1341_v2 = vld [vmem:[%s112_s27] ss:$0 sm:$0xff]  ;;  %v1169_v3 = vld [vmem:[%s1806_s5 + $0x38] sm:$0xff]  ;;  %vm384_vm0 = vcmask 1043456   ;;  %v1168_v5 = vld [vmem:[%s1806_s5 + $0x30] sm:$0xff]  ;;  %v1259_v8 = vmov 0.0  }
   0xe   :  { %294 = vmatpush.bf16.msra.mxu0 %v1169_v3  ;;  %1178 = vmatpush.bf16.msra.mxu3 %v1169_v3  ;;  %v181_v6 = vld [vmem:[%s1805_s4] sm:$0xf]  ;;  %v1167_v11 = vld [vmem:[%s1806_s5 + $0x28] sm:$0xff]  ;;  %v1165_v13 = vld [vmem:[%s1806_s5 + $0x18] sm:$0xff]  ;;  %vm359_vm2 = vcmask 64512  }
   0xf   :  { %v1346_v4 = vshrl.u32 %v172_v1, 7  ;;  %v386_v7 = vsel %vm384_vm0, %v181_v6, 0  ;;  %v1166_v12 = vld [vmem:[%s1806_s5 + $0x20] sm:$0xff]  ;;  %v1164_v14 = vld [vmem:[%s1806_s5 + $0x10] sm:$0xff]  ;;  %v1163_v15 = vld [vmem:[%s1806_s5 + $0x8] sm:$0xff] }
  0x10   :  { %395 = vmatpush.bf16.msra.mxu1 %v386_v7  ;;  %1186 = vmatpush.bf16.msra.mxu2 %v386_v7  ;;  %v1162_v16 = vld [vmem:[%s1806_s5] sm:$0xff]  ;;  %v1155_v18 = vld [vmem:[%s1336_s12 + $0x8] sm:$0xff]  ;;  %v1156_v20 = vld [vmem:[%s1336_s12 + $0x10] sm:$0xff] }
  0x11   :  { %vm177_vm1 = vcmp.eq.s32.totalorder %v1341_v2, %v1346_v4  ;;  %v1154_v17 = vld [vmem:[%s1336_s12] sm:$0xff]  ;;  %v1157_v22 = vld [vmem:[%s1336_s12 + $0x18] sm:$0xff]  ;;  %v1159_v25 = vld [vmem:[%s1336_s12 + $0x28] sm:$0xff] }
  0x12   :  { %v1025_v9 = vsel %vm177_vm1, 1.0, %v1259_v8  ;;  %295 = vmatpush.bf16.msra.mxu0 %v1168_v5  ;;  %1179 = vmatpush.bf16.msra.mxu3 %v1168_v5  ;;  %v1158_v23 = vld [vmem:[%s1336_s12 + $0x20] sm:$0xff]  ;;  %v1160_v27 = vld [vmem:[%s1336_s12 + $0x30] sm:$0xff]  ;;  %v1161_v29 = vld [vmem:[%s1336_s12 + $0x38] sm:$0xff] }
  0x13   :  { %v180_v10 = vpack.c.bf16 %v1025_v9, %v1025_v9  ;;  %v1396_v59 = vld [vmem:[%s1807_s6] ss:$0 sm:$0xff] }
  0x15   :  { %343 = vxpose.xlu0.c.b16.start.end [1/1] (short) %v180_v10, 128 }
  0x16   :  { %296 = vmatpush.bf16.msra.mxu0 %v1167_v11  ;;  %1180 = vmatpush.bf16.msra.mxu3 %v1167_v11 }
  0x1a   :  { %297 = vmatpush.bf16.msra.mxu0 %v1166_v12  ;;  %1181 = vmatpush.bf16.msra.mxu3 %v1166_v12 }
  0x1e   :  { %298 = vmatpush.bf16.msra.mxu0 %v1165_v13  ;;  %1182 = vmatpush.bf16.msra.mxu3 %v1165_v13 }
  0x22   :  { %299 = vmatpush.bf16.msra.mxu0 %v1164_v14  ;;  %1183 = vmatpush.bf16.msra.mxu3 %v1164_v14 }
  0x26   :  { %300 = vmatpush.bf16.msra.mxu0 %v1163_v15  ;;  %1184 = vmatpush.bf16.msra.mxu3 %v1163_v15 }
  0x2a   :  { %301 = vmatpush.bf16.msra.mxu0 %v1162_v16  ;;  %1185 = vmatpush.bf16.msra.mxu3 %v1162_v16 }
  0x2d   :  { %302 = vmatmul.bf16.vlgmr.msra.gmra.mxu0 %v1154_v17  ;;  %322 = vmatmul.bf16.vlgmr.msra.gmra.mxu3 %v1158_v23 }
  0x3d   :  { %307 = vmatmul.bf16.gmra.mxu0 %v1155_v18  ;;  %327 = vmatmul.bf16.gmra.mxu3 %v1159_v25 }
  0x4d   :  { %312 = vmatmul.bf16.gmra.mxu0 %v1156_v20  ;;  %332 = vmatmul.bf16.gmra.mxu3 %v1160_v27 }
  0x5d   :  { %317 = vmatmul.bf16.gmra.mxu0 %v1157_v22  ;;  %337 = vmatmul.bf16.gmra.mxu3 %v1161_v29 }
  0xaa   :  { %v303_v33 = vpop.f32.mrf.mxu0 }
  0xb0   :  { %v323_v47 = vpop.f32.mrf.mxu3 }
  0xb2   :  { %v305_v36 = vpop.f32.mrf.mxu0 }
  0xb8   :  { %v325_v50 = vpop.f32.mrf.mxu3 }
  0xba   :  { %v308_v43 = vpop.f32.mrf.mxu0 }
  0xc0   :  { %v328_v53 = vpop.f32.mrf.mxu3 }
  0xc1   :  { %v351_v19 = vpop.trf.xlu0 }
  0xc2   :  { %1090 = vmatmul.msk.bf16.vlgmr.msra.gmra.mxu1 %vm359_vm2, %v351_v19  ;;  %v310_v45 = vpop.f32.mrf.mxu0 }
  0xc8   :  { %v330_v56 = vpop.f32.mrf.mxu3 }
  0xca   :  { %v313_v48 = vpop.f32.mrf.mxu0 }
  0xd0   :  { %v333_v14 = vpop.f32.mrf.mxu3 }
  0xd1   :  { %v352_v21 = vpop.trf.xlu0 }
  0xd2   :  { %1091 = vmatmul.msk.bf16.gmra.mxu1 %vm359_vm2, %v352_v21  ;;  %v315_v51 = vpop.f32.mrf.mxu0 }
  0xda   :  { %v318_v55 = vpop.f32.mrf.mxu0 }
  0xe1   :  { %v353_v24 = vpop.trf.xlu0 }
  0xe2   :  { %1092 = vmatmul.msk.bf16.gmra.mxu1 %vm359_vm2, %v353_v24  ;;  %v320_v3 = vpop.f32.mrf.mxu0 }
  0xf1   :  { %v354_v26 = vpop.trf.xlu0 }
  0xf2   :  { %1093 = vmatmul.msk.bf16.gmra.mxu1 %vm359_vm2, %v354_v26 }
 0x101   :  { %v355_v28 = vpop.trf.xlu0 }
 0x102   :  { %1094 = vmatmul.msk.bf16.gmra.mxu1 %vm359_vm2, %v355_v28 }
 0x111   :  { %v356_v30 = vpop.trf.xlu0 }
 0x112   :  { %1095 = vmatmul.msk.bf16.gmra.mxu1 %vm359_vm2, %v356_v30 }
 0x121   :  { %v357_v31 = vpop.trf.xlu0 }
 0x122   :  { %1096 = vmatmul.msk.bf16.vlgmr.msra.gmra.mxu2 %vm359_vm2, %v357_v31 }
 0x131   :  { %v358_v32 = vpop.trf.xlu0 }
 0x132   :  { %1097 = vmatmul.msk.bf16.gmra.mxu2 %vm359_vm2, %v358_v32 }
 0x13f   :  { %v397_v34 = vpop.f32.mrf.mxu1 }
 0x140   :  { %v398_v35 = vadd.f32 %v397_v34, %v303_v33 }
 0x142   :  { %v441_v11 = vadd.f32 %v1396_v59, %v398_v35 }
 0x144   :  { %v1098_v22 = vmul.f32 -1.442695, %v441_v11 }
 0x147   :  { %v399_v37 = vpop.f32.mrf.mxu1 }
 0x148   :  { %v400_v38 = vadd.f32 %v399_v37, %v305_v36  ;;  %v335_v37 = vpop.f32.mrf.mxu3 }
 0x14a   :  { %v442_v15 = vadd.f32 %v1396_v59, %v400_v38 }
 0x14c   :  { %v1099_v25 = vmul.f32 -1.442695, %v442_v15 }
 0x14f   :  { %v402_v39 = vpop.f32.mrf.mxu1 }
 0x150   :  { %v403_v17 = vadd.f32 %v402_v39, %v308_v43 }
 0x152   :  { %v443_v26 = vadd.f32 %v1396_v59, %v403_v17 }
 0x154   :  { %v1100_v36 = vmul.f32 -1.442695, %v443_v26 }
 0x157   :  { %v404_v40 = vpop.f32.mrf.mxu1 }
 0x158   :  { %v405_v23 = vadd.f32 %v404_v40, %v310_v45 }
 0x15a   :  { %v444_v32 = vadd.f32 %v1396_v59, %v405_v23 }
 0x15f   :  { %v407_v41 = vpop.f32.mrf.mxu1 }
 0x160   :  { %v408_v57 = vadd.f32 %v407_v41, %v313_v48 }
 0x162   :  { %v445_v1 = vadd.f32 %v1396_v59, %v408_v57 }
 0x164   :  { %v1102_v12 = vmul.f32 -1.442695, %v445_v1 }
 0x167   :  { %v409_v42 = vpop.f32.mrf.mxu1 }
 0x168   :  { %v410_v60 = vadd.f32 %v409_v42, %v315_v51  ;;  %v1101_v42 = vmul.f32 -1.442695, %v444_v32 }
 0x16a   :  { %v446_v5 = vadd.f32 %v1396_v59, %v410_v60 }
 0x16c   :  { %v1103_v16 = vmul.f32 -1.442695, %v446_v5 }
 0x16f   :  { %v412_v44 = vpop.f32.mrf.mxu1 }
 0x170   :  { %v413_v6 = vadd.f32 %v412_v44, %v318_v55 }
 0x172   :  { %v447_v18 = vadd.f32 %v1396_v59, %v413_v6 }
 0x174   :  { %v1104_v27 = vmul.f32 -1.442695, %v447_v18 }
 0x177   :  { %v414_v46 = vpop.f32.mrf.mxu1 }
 0x178   :  { %v415_v9 = vadd.f32 %v414_v46, %v320_v3 }
 0x17a   :  { %v448_v20 = vadd.f32 %v1396_v59, %v415_v9 }
 0x17c   :  { %v1105_v29 = vmul.f32 -1.442695, %v448_v20 }
 0x17f   :  { %v417_v49 = vpop.f32.mrf.mxu1 }
 0x180   :  { %v418_v13 = vadd.f32 %v417_v49, %v323_v47 }
 0x182   :  { %v449_v24 = vadd.f32 %v1396_v59, %v418_v13 }
 0x184   :  { %v1106_v33 = vmul.f32 -1.442695, %v449_v24 }
 0x187   :  { %v419_v52 = vpop.f32.mrf.mxu1 }
 0x188   :  { %v420_v62 = vadd.f32 %v419_v52, %v325_v50 }
 0x18a   :  { %v450_v7 = vadd.f32 %v1396_v59, %v420_v62 }
 0x18c   :  { %v1107_v19 = vmul.f32 -1.442695, %v450_v7 }
 0x18f   :  { %v422_v54 = vpop.f32.mrf.mxu1 }
 0x190   :  { %v423_v63 = vadd.f32 %v422_v54, %v328_v53 }
 0x192   :  { %v451_v10 = vadd.f32 %v1396_v59, %v423_v63  ;;  %v338_v63 = vpop.f32.mrf.mxu3 }
 0x194   :  { %v1108_v21 = vmul.f32 -1.442695, %v451_v10 }
 0x197   :  { %v424_v58 = vpop.f32.mrf.mxu1 }
 0x198   :  { %v425_v61 = vadd.f32 %v424_v58, %v330_v56 }
 0x19a   :  { %v452_v0 = vadd.f32 %v1396_v59, %v425_v61  ;;  %v340_v26 = vpop.f32.mrf.mxu3 }
 0x19c   :  { %v1109_v8 = vmul.f32 -1.442695, %v452_v0 }
 0x19e   :  { %1194 = vpow2.f32 %v1109_v8 }
 0x19f   :  { %1196 = vpow2.f32 %v1102_v12 }
 0x1a0   :  { %1198 = vpow2.f32 %v1103_v16 }
 0x1a1   :  { %1200 = vpow2.f32 %v1107_v19 }
 0x1a2   :  { %1202 = vpow2.f32 %v1108_v21 }
 0x1a3   :  { %1204 = vpow2.f32 %v1098_v22 }
 0x1a4   :  { %v1195_v31 = vpop.eup %1194  ;;  %1206 = vpow2.f32 %v1099_v25 }
 0x1a5   :  { %v427_v28 = vpop.f32.mrf.mxu2  ;;  %v1197_v35 = vpop.eup %1196  ;;  %1208 = vpow2.f32 %v1104_v27  ;;  %v1411_v39 = vadd.f32 1.0, %v1195_v31 }
 0x1a6   :  { %v428_v30 = vadd.f32 %v427_v28, %v333_v14  ;;  %v1199_v38 = vpop.eup %1198  ;;  %1210 = vpow2.f32 %v1105_v29  ;;  %v1413_v44 = vadd.f32 1.0, %v1197_v35 }
 0x1a7   :  { %v1201_v41 = vpop.eup %1200  ;;  %1212 = vpow2.f32 %v1106_v33  ;;  %v1415_v46 = vadd.f32 1.0, %v1199_v38  ;;  %vm691_vm8 = vweird.f32 %v1411_v39 }
 0x1a8   :  { %v453_v34 = vadd.f32 %v1396_v59, %v428_v30  ;;  %v1203_v43 = vpop.eup %1202  ;;  %v1417_v49 = vadd.f32 1.0, %v1201_v41 }
 0x1a9   :  { %v1205_v45 = vpop.eup %1204  ;;  %v1420_v52 = vadd.f32 1.0, %v1203_v43 }
 0x1aa   :  { %v1110_v40 = vmul.f32 -1.442695, %v453_v34  ;;  %v1207_v48 = vpop.eup %1206  ;;  %v1440_v7 = vadd.f32 1.0, %v1205_v45  ;;  %vm661_vm10 = vweird.f32 %v1417_v49 }
 0x1ab   :  { %v1209_v51 = vpop.eup %1208  ;;  %v1471_v25 = vadd.f32 1.0, %v1207_v48  ;;  %vm676_vm13 = vweird.f32 %v1420_v52 }
 0x1ac   :  { %1214 = vpow2.f32 %v1110_v40  ;;  %v1211_v53 = vpop.eup %1210  ;;  %v1425_v57 = vadd.f32 1.0, %v1209_v51 }
 0x1ad   :  { %1216 = vpow2.f32 %v1100_v36  ;;  %v429_v47 = vpop.f32.mrf.mxu2  ;;  %v1213_v55 = vpop.eup %1212  ;;  %v1428_v61 = vadd.f32 1.0, %v1211_v53 }
 0x1ae   :  { %1218 = vrcp.f32 %v1411_v39  ;;  %v430_v50 = vadd.f32 %v429_v47, %v335_v37  ;;  %v1435_v1 = vadd.f32 1.0, %v1213_v55 }
 0x1af   :  { %1220 = vpow2.f32 %v1101_v42 }
 0x1b0   :  { %1222 = vrcp.f32 %v1413_v44  ;;  %v454_v54 = vadd.f32 %v1396_v59, %v430_v50 }
 0x1b1   :  { %1224 = vrcp.f32 %v1415_v46 }
 0x1b2   :  { %v1215_v56 = vpop.eup %1214  ;;  %1226 = vrcp.f32 %v1417_v49  ;;  %v1111_v58 = vmul.f32 -1.442695, %v454_v54 }
 0x1b3   :  { %v1217_v60 = vpop.eup %1216  ;;  %1228 = vrcp.f32 %v1420_v52  ;;  %v1431_v62 = vadd.f32 1.0, %v1215_v56 }
 0x1b4   :  { %v1433_v0 = vpop.eup %1218  ;;  %1230 = vpow2.f32 %v1111_v58  ;;  %v1445_v10 = vadd.f32 1.0, %v1217_v60 }
 0x1b5   :  { %v1221_v3 = vpop.eup %1220  ;;  %1232 = vrcp.f32 %v1431_v62  ;;  %v432_v5 = vpop.f32.mrf.mxu2  ;;  %v687_v11 = vmul.f32 %v1433_v0, %v1411_v39  ;;  %v712_v33 = vand.u32 2147483648, %v1431_v62  ;;  %v710_v41 = vand.u32 2147483647, %v1431_v62 }
 0x1b6   :  { %v1438_v6 = vpop.eup %1222  ;;  %1234 = vrcp.f32 %v1425_v57  ;;  %v433_v8 = vadd.f32 %v432_v5, %v338_v63  ;;  %v1457_v16 = vadd.f32 1.0, %v1221_v3  ;;  %vm706_vm4 = vweird.f32 %v1431_v62  ;;  %v1516_v3 = vld [vmem:[%s1808_s7] ss:$0 sm:$0xff]  ;;  %s813_s7 = sld [smem:[#allocation6]] }
 0x1b7   :  { %v1443_v9 = vpop.eup %1224  ;;  %1236 = vrcp.f32 %v1428_v61  ;;  %v688_v20 = vsub.f32 1.0, %v687_v11  ;;  %v1464_v21 = vmul.f32 %v1438_v6, %v1413_v44  ;;  %v713_v56 = vor.u32 1.1754944e-38, %v712_v33 }
 0x1b8   :  { %v1450_v12 = vpop.eup %1226  ;;  %1238 = vrcp.f32 %v1435_v1  ;;  %v455_v13 = vadd.f32 %v1396_v59, %v433_v8  ;;  %v1486_v36 = vmul.f32 %v1443_v9, %v1415_v46  ;;  %vm692_vm6 = vweird.f32 %v1433_v0 }
 0x1b9   :  { %v1454_v14 = vpop.eup %1228  ;;  %1240 = vrcp.f32 %v1440_v7  ;;  %v657_v28 = vmul.f32 %v1450_v12, %v1417_v49  ;;  %v689_v34 = vmul.f32 %v1433_v0, %v688_v20  ;;  %v583_v35 = vsub.f32 1.0, %v1464_v21  ;;  %vm1527_vm9 = vmor %vm691_vm8, %vm692_vm6 }
 0x1ba   :  { %v1231_v15 = vpop.eup %1230  ;;  %v1112_v17 = vmul.f32 -1.442695, %v455_v13  ;;  %1242 = vrcp.f32 %v1445_v10  ;;  %v672_v32 = vmul.f32 %v1454_v14, %v1420_v52  ;;  %vm711_vm7 = vcmp.eq.f32.partialorder %v710_v41, 8.507059e+37 }
 0x1bb   :  { %v1233_v18 = vpop.eup %1232  ;;  %v1460_v19 = vadd.f32 1.0, %v1231_v15  ;;  %v658_v43 = vsub.f32 1.0, %v657_v28  ;;  %v690_v58 = vadd.f32 %v1433_v0, %v689_v34  ;;  %v697_v8 = vand.u32 2147483648, %v1411_v39 }
 0x1bc   :  { %v1466_v22 = vpop.eup %1234  ;;  %1244 = vpow2.f32 %v1112_v17  ;;  %v702_v23 = vmul.f32 %v1233_v18, %v1431_v62  ;;  %vm707_vm3 = vweird.f32 %v1233_v18  ;;  %v673_v53 = vsub.f32 1.0, %v672_v32 }
 0x1bd   :  { %v1469_v24 = vpop.eup %1236  ;;  %1246 = vrcp.f32 %v1460_v19  ;;  %v434_v27 = vpop.f32.mrf.mxu2  ;;  %v1500_v47 = vmul.f32 %v1466_v22, %v1425_v57  ;;  %vm708_vm5 = vmor %vm706_vm4, %vm707_vm3  ;;  %v659_v11 = vmul.f32 %v1450_v12, %v658_v43  ;;  %v695_v15 = vand.u32 2147483647, %v1411_v39 }
 0x1be   :  { %v1476_v29 = vpop.eup %1238  ;;  %1248 = vrcp.f32 %v1457_v16  ;;  %v435_v30 = vadd.f32 %v434_v27, %v340_v26  ;;  %v703_v31 = vsub.f32 1.0, %v702_v23  ;;  %v1504_v48 = vmul.f32 %v1469_v24, %v1428_v61 }
 0x1bf   :  { %v1488_v37 = vpop.eup %1240  ;;  %v1496_v45 = vmul.f32 %v1476_v29, %v1435_v1  ;;  %v727_v20 = vand.u32 2147483648, %v1460_v19  ;;  %v665_v23 = vand.u32 2147483647, %v1417_v49  ;;  %v674_v26 = vmul.f32 %v1454_v14, %v673_v53 }
 0x1c0   :  { %v456_v38 = vadd.f32 %v1396_v59, %v435_v30  ;;  %v704_v40 = vmul.f32 %v1233_v18, %v703_v31  ;;  %v1492_v42 = vpop.eup %1242  ;;  %v694_v39 = vsel %vm1527_vm9, %v1433_v0, %v690_v58  ;;  %v725_v28 = vand.u32 2147483647, %v1460_v19 }
 0x1c1   :  { %v698_v30 = vor.u32 1.1754944e-38, %v697_v8  ;;  %vm662_vm12 = vweird.f32 %v1450_v12  ;;  %v643_v31 = vsub.f32 1.0, %v1496_v45  ;;  %vm696_vm14 = vcmp.eq.f32.partialorder %v695_v15, 8.507059e+37 }
 0x1c2   :  { %v1245_v59 = vpop.eup %1244  ;;  %v1113_v50 = vmul.f32 -1.442695, %v456_v38  ;;  %v705_v51 = vadd.f32 %v1233_v18, %v704_v40  ;;  %vm721_vm15 = vweird.f32 %v1460_v19  ;;  %v660_v34 = vadd.f32 %v1450_v12, %v659_v11  ;;  %vm1558_vm4 = vmor %vm661_vm10, %vm662_vm12 }
 0x1c3   :  { %v1247_v54 = vpop.eup %1246  ;;  %v1507_v55 = vadd.f32 1.0, %v1245_v59  ;;  %v699_v40 = vsel %vm696_vm14, %v698_v30, %v694_v39  ;;  %v728_v41 = vor.u32 1.1754944e-38, %v727_v20  ;;  %vm677_vm2 = vweird.f32 %v1454_v14 }
 0x1c4   :  { %v1511_v60 = vpop.eup %1248  ;;  %1250 = vpow2.f32 %v1113_v50  ;;  %v709_v63 = vsel %vm708_vm5, %v1233_v18, %v705_v51  ;;  %v717_v62 = vmul.f32 %v1247_v54, %v1460_v19  ;;  %vm722_vm11 = vweird.f32 %v1247_v54  ;;  %vm1570_vm5 = vmor %vm676_vm13, %vm677_vm2 }
 0x1c5   :  { %1252 = vrcp.f32 %v1507_v55  ;;  %v714_v5 = vsel %vm711_vm7, %v713_v56, %v709_v63  ;;  %vm723_vm0 = vmor %vm721_vm15, %vm722_vm11  ;;  %vm726_vm3 = vcmp.eq.f32.partialorder %v725_v28, 8.507059e+37  ;;  %v675_v59 = vadd.f32 %v1454_v14, %v674_v26 }
 0x1c6   :  { %v777_v13 = vmul.f32 %v1516_v3, %v714_v5  ;;  %v718_v17 = vsub.f32 1.0, %v717_v62  ;;  %v667_v19 = vand.u32 2147483648, %v1417_v49  ;;  %v682_v51 = vand.u32 2147483648, %v1420_v52 }
 0x1c7   :  { %v776_v53 = vmul.f32 %v1516_v3, %v699_v40  ;;  %v680_v58 = vand.u32 2147483647, %v1420_v52  ;;  %v664_v62 = vsel %vm1558_vm4, %v1450_v12, %v660_v34  ;;  %v742_v49 = vand.u32 2147483648, %v1507_v55 }
 0x1c8   :  { %805 = vadd.xlane.f32.xlu1 %v777_v13  ;;  %v719_v27 = vmul.f32 %v1247_v54, %v718_v17  ;;  %v644_v8 = vmul.f32 %v1476_v29, %v643_v31  ;;  %v613_v11 = vsub.f32 1.0, %v1500_v47  ;;  %v679_v12 = vsel %vm1570_vm5, %v1454_v14, %v675_v59 }
 0x1c9   :  { %v740_v52 = vand.u32 2147483647, %v1507_v55  ;;  %v668_v15 = vor.u32 1.1754944e-38, %v667_v19  ;;  %v683_v17 = vor.u32 1.1754944e-38, %v682_v51  ;;  %vm646_vm7 = vweird.f32 %v1435_v1 }
 0x1ca   :  { %v1251_v32 = vpop.eup %1250  ;;  %v720_v33 = vadd.f32 %v1247_v54, %v719_v27  ;;  %vm616_vm8 = vweird.f32 %v1425_v57  ;;  %v628_v18 = vsub.f32 1.0, %v1504_v48  ;;  %vm666_vm9 = vcmp.eq.f32.partialorder %v665_v23, 8.507059e+37 }
 0x1cb   :  { %v1253_v38 = vpop.eup %1252  ;;  %v1544_v0 = vadd.f32 1.0, %v1251_v32  ;;  %vm681_vm10 = vcmp.eq.f32.partialorder %v680_v58, 8.507059e+37  ;;  %vm736_vm11 = vweird.f32 %v1507_v55  ;;  %v669_v26 = vsel %vm666_vm9, %v668_v15, %v664_v62 }
 0x1cc   :  { %v724_v43 = vsel %vm723_vm0, %v1247_v54, %v720_v33  ;;  %v732_v45 = vmul.f32 %v1253_v38, %v1507_v55  ;;  %vm737_vm6 = vweird.f32 %v1253_v38  ;;  %v684_v14 = vsel %vm681_vm10, %v683_v17, %v679_v12 }
 0x1cd   :  { %1254 = vrcp.f32 %v1544_v0  ;;  %v729_v50 = vsel %vm726_vm3, %v728_v41, %v724_v43  ;;  %vm738_vm12 = vmor %vm736_vm11, %vm737_vm6  ;;  %v743_v39 = vor.u32 1.1754944e-38, %v742_v49  ;;  %vm647_vm13 = vweird.f32 %v1476_v29 }
 0x1ce   :  { %v778_v56 = vmul.f32 %v1516_v3, %v729_v50  ;;  %v733_v63 = vsub.f32 1.0, %v732_v45  ;;  %vm741_vm14 = vcmp.eq.f32.partialorder %v740_v52, 8.507059e+37  ;;  %v645_v28 = vadd.f32 %v1476_v29, %v644_v8  ;;  %vm1596_vm15 = vmor %vm646_vm7, %vm647_vm13 }
 0x1cf   :  { %v650_v48 = vand.u32 2147483647, %v1435_v1  ;;  %v652_v23 = vand.u32 2147483648, %v1435_v1  ;;  %v620_v55 = vand.u32 2147483647, %v1425_v57  ;;  %v774_v32 = vmul.f32 %v1516_v3, %v669_v26 }
 0x1d0   :  { %803 = vadd.xlane.f32.xlu1 %v776_v53  ;;  %807 = vadd.xlane.f32.xlu2 %v778_v56  ;;  %v734_v13 = vmul.f32 %v1253_v38, %v733_v63  ;;  %v775_v33 = vmul.f32 %v1516_v3, %v684_v14  ;;  %v757_v41 = vand.u32 2147483648, %v1544_v0  ;;  %v614_v43 = vmul.f32 %v1466_v22, %v613_v11 }
 0x1d1   :  { %v622_v59 = vand.u32 2147483648, %v1425_v57  ;;  %v629_v45 = vmul.f32 %v1469_v24, %v628_v18  ;;  %v649_v50 = vsel %vm1596_vm15, %v1476_v29, %v645_v28  ;;  %v755_v1 = vand.u32 2147483647, %v1544_v0 }
 0x1d2   :  { %v735_v47 = vadd.f32 %v1253_v38, %v734_v13  ;;  %v653_v51 = vor.u32 1.1754944e-38, %v652_v23  ;;  %vm617_vm2 = vweird.f32 %v1466_v22  ;;  %vm631_vm3 = vweird.f32 %v1428_v61 }
 0x1d3   :  { %v1255_v20 = vpop.eup %1254  ;;  %v598_v53 = vsub.f32 1.0, %v1486_v36  ;;  %vm651_vm4 = vcmp.eq.f32.partialorder %v650_v48, 8.507059e+37  ;;  %vm751_vm5 = vweird.f32 %v1544_v0  ;;  %vm632_vm6 = vweird.f32 %v1469_v24  ;;  %vm1620_vm10 = vmor %vm616_vm8, %vm617_vm2 }
 0x1d4   :  { %v739_v27 = vsel %vm738_vm12, %v1253_v38, %v735_v47  ;;  %v747_v30 = vmul.f32 %v1255_v20, %v1544_v0  ;;  %vm752_vm0 = vweird.f32 %v1255_v20  ;;  %v654_v54 = vsel %vm651_vm4, %v653_v51, %v649_v50  ;;  %vm1628_vm11 = vmor %vm631_vm3, %vm632_vm6 }
 0x1d5   :  { %v744_v31 = vsel %vm741_vm14, %v743_v39, %v739_v27  ;;  %vm753_vm7 = vmor %vm751_vm5, %vm752_vm0  ;;  %v758_v29 = vor.u32 1.1754944e-38, %v757_v41  ;;  %v635_v58 = vand.u32 2147483647, %v1428_v61  ;;  %v637_v63 = vand.u32 2147483648, %v1428_v61 }
 0x1d6   :  { %v779_v34 = vmul.f32 %v1516_v3, %v744_v31  ;;  %v748_v40 = vsub.f32 1.0, %v747_v30  ;;  %vm756_vm9 = vcmp.eq.f32.partialorder %v755_v1, 8.507059e+37  ;;  %v615_v5 = vadd.f32 %v1466_v22, %v614_v43 }
 0x1d7   :  { %v630_v0 = vadd.f32 %v1469_v24, %v629_v45  ;;  %1256 = vrcp.f32 %v1471_v25  ;;  %v773_v11 = vmul.f32 %v1516_v3, %v654_v54  ;;  %v552_v57 = vmul.f32 %v1492_v42, %v1445_v10 }
 0x1d8   :  { %799 = vadd.xlane.f32.xlu1 %v774_v32  ;;  %801 = vadd.xlane.f32.xlu2 %v775_v33  ;;  %v749_v19 = vmul.f32 %v1255_v20, %v748_v40  ;;  %v567_v13 = vmul.f32 %v1511_v60, %v1457_v16  ;;  %vm1638_vm8 = vcmp.eq.f32.partialorder %v620_v55, 8.507059e+37  ;;  %v623_v15 = vor.u32 1.1754944e-38, %v622_v59 }
 0x1d9   :  { %809 = vadd.xlane.f32.xlu0 %v779_v34  ;;  %v638_v61 = vor.u32 1.1754944e-38, %v637_v63  ;;  %v584_v17 = vmul.f32 %v1438_v6, %v583_v35  ;;  %v619_v18 = vsel %vm1620_vm10, %v1466_v22, %v615_v5  ;;  %v634_v47 = vsel %vm1628_vm11, %v1469_v24, %v630_v0 }
 0x1da   :  { %v750_v56 = vadd.f32 %v1255_v20, %v749_v19  ;;  %vm636_vm12 = vcmp.eq.f32.partialorder %v635_v58, 8.507059e+37  ;;  %vm586_vm13 = vweird.f32 %v1413_v44  ;;  %vm587_vm14 = vweird.f32 %v1438_v6 }
 0x1db   :  { %v590_v21 = vand.u32 2147483647, %v1413_v44  ;;  %vm601_vm15 = vweird.f32 %v1415_v46  ;;  %vm602_vm0 = vweird.f32 %v1443_v9  ;;  %v553_v35 = vsub.f32 1.0, %v552_v57  ;;  %vm1664_vm2 = vmor %vm586_vm13, %vm587_vm14 }
 0x1dc   :  { %v754_v62 = vsel %vm753_vm7, %v1255_v20, %v750_v56  ;;  %v599_v20 = vmul.f32 %v1443_v9, %v598_v53  ;;  %v624_v22 = vsel %vm1638_vm8, %v623_v15, %v619_v18  ;;  %v639_v24 = vsel %vm636_vm12, %v638_v61, %v634_v47  ;;  %vm1670_vm3 = vmor %vm601_vm15, %vm602_vm0 }
 0x1dd   :  { %v759_v49 = vsel %vm756_vm9, %v758_v29, %v754_v62  ;;  %v1657_v26 = vpop.eup %1256  ;;  %v592_v14 = vand.u32 2147483648, %v1413_v44  ;;  %v607_v39 = vand.u32 2147483648, %v1415_v46  ;;  %v585_v27 = vadd.f32 %v1438_v6, %v584_v17 }
 0x1de   :  { %v780_v12 = vmul.f32 %v1516_v3, %v759_v49  ;;  %v600_v30 = vadd.f32 %v1443_v9, %v599_v20  ;;  %v605_v31 = vand.u32 2147483647, %v1415_v46  ;;  %v568_v48 = vsub.f32 1.0, %v567_v13 }
 0x1df   :  { %v771_v55 = vmul.f32 %v1516_v3, %v624_v22  ;;  %v772_v44 = vmul.f32 %v1516_v3, %v639_v24  ;;  %v522_v32 = vmul.f32 %v1488_v37, %v1440_v7  ;;  %v537_v33 = vmul.f32 %v1657_v26, %v1471_v25 }
 0x1e0   :  { %797 = vadd.xlane.f32.xlu2 %v773_v11  ;;  %811 = vadd.xlane.f32.xlu1 %v780_v12  ;;  %vm1680_vm4 = vcmp.eq.f32.partialorder %v590_v21, 8.507059e+37  ;;  %v593_v46 = vor.u32 1.1754944e-38, %v592_v14  ;;  %v608_v40 = vor.u32 1.1754944e-38, %v607_v39  ;;  %v554_v38 = vmul.f32 %v1492_v42, %v553_v35 }
 0x1e1   :  { %v589_v41 = vsel %vm1664_vm2, %v1438_v6, %v585_v27  ;;  %v604_v43 = vsel %vm1670_vm3, %v1443_v9, %v600_v30  ;;  %vm606_vm5 = vcmp.eq.f32.partialorder %v605_v31, 8.507059e+37  ;;  %v569_v59 = vmul.f32 %v1511_v60, %v568_v48 }
 0x1e2   :  { %vm556_vm6 = vweird.f32 %v1445_v10  ;;  %vm557_vm7 = vweird.f32 %v1492_v42  ;;  %v560_v45 = vand.u32 2147483647, %v1445_v10  ;;  %vm571_vm9 = vweird.f32 %v1457_v16 }
 0x1e3   :  { %vm572_vm10 = vweird.f32 %v1511_v60  ;;  %v523_v50 = vsub.f32 1.0, %v522_v32  ;;  %v594_v6 = vsel %vm1680_vm4, %v593_v46, %v589_v41  ;;  %v609_v19 = vsel %vm606_vm5, %v608_v40, %v604_v43  ;;  %vm1702_vm11 = vmor %vm556_vm6, %vm557_vm7 }
 0x1e4   :  { %v562_v9 = vand.u32 2147483648, %v1445_v10  ;;  %v577_v1 = vand.u32 2147483648, %v1457_v16  ;;  %v555_v51 = vadd.f32 %v1492_v42, %v554_v38  ;;  %v570_v56 = vadd.f32 %v1511_v60, %v569_v59  ;;  %vm1708_vm8 = vmor %vm571_vm9, %vm572_vm10 }
 0x1e5   :  { %v575_v54 = vand.u32 2147483647, %v1457_v16  ;;  %v538_v29 = vsub.f32 1.0, %v537_v33  ;;  %v769_v63 = vmul.f32 %v1516_v3, %v594_v6  ;;  %v770_v10 = vmul.f32 %v1516_v3, %v609_v19  ;;  %vm1114_vm7 = vmpackc.low %vm177_vm1, %vm177_vm1 }
 0x1e6   :  { %vm561_vm12 = vcmp.eq.f32.partialorder %v560_v45, 8.507059e+37  ;;  %v563_v62 = vor.u32 1.1754944e-38, %v562_v9  ;;  %v578_v5 = vor.u32 1.1754944e-38, %v577_v1  ;;  %v524_v36 = vmul.f32 %v1488_v37, %v523_v50  ;;  %v166_v45 = vld [vmem:[%s1336_s12 + $0x30] sm:$0xff]  }
 0x1e7   :  { %v559_v16 = vsel %vm1702_vm11, %v1492_v42, %v555_v51  ;;  %v574_v0 = vsel %vm1708_vm8, %v1511_v60, %v570_v56  ;;  %vm576_vm13 = vcmp.eq.f32.partialorder %v575_v54, 8.507059e+37  ;;  %v539_v49 = vmul.f32 %v1657_v26, %v538_v29 }
 0x1e8   :  { %793 = vadd.xlane.f32.xlu2 %v771_v55  ;;  %795 = vadd.xlane.f32.xlu1 %v772_v44  ;;  %vm526_vm14 = vweird.f32 %v1440_v7  ;;  %vm527_vm15 = vweird.f32 %v1488_v37  ;;  %vm541_vm0 = vweird.f32 %v1471_v25  ;;  %vm542_vm2 = vweird.f32 %v1657_v26 }
 0x1e9   :  { %v564_v8 = vsel %vm561_vm12, %v563_v62, %v559_v16  ;;  %v579_v11 = vsel %vm576_vm13, %v578_v5, %v574_v0  ;;  %v532_v12 = vand.u32 2147483648, %v1440_v7  ;;  %v547_v42 = vand.u32 2147483648, %v1471_v25  ;;  %vm1729_vm3 = vmor %vm526_vm14, %vm527_vm15 }
 0x1ea   :  { %v525_v57 = vadd.f32 %v1488_v37, %v524_v36  ;;  %v530_v13 = vand.u32 2147483647, %v1440_v7  ;;  %v540_v52 = vadd.f32 %v1657_v26, %v539_v49  ;;  %v545_v15 = vand.u32 2147483647, %v1471_v25  ;;  %vm543_vm4 = vmor %vm541_vm0, %vm542_vm2 }
 0x1eb   :  { %v767_v61 = vmul.f32 %v1516_v3, %v564_v8  ;;  %v768_v17 = vmul.f32 %v1516_v3, %v579_v11  ;;  %v533_v18 = vor.u32 1.1754944e-38, %v532_v12  ;;  %v548_v47 = vor.u32 1.1754944e-38, %v547_v42 }
 0x1ec   :  { %v529_v20 = vsel %vm1729_vm3, %v1488_v37, %v525_v57  ;;  %vm531_vm5 = vcmp.eq.f32.partialorder %v530_v13, 8.507059e+37  ;;  %v544_v7 = vsel %vm543_vm4, %v1657_v26, %v540_v52  ;;  %vm546_vm6 = vcmp.eq.f32.partialorder %v545_v15, 8.507059e+37  ;;  %v162_v15 = vld [vmem:[%s1336_s12 + $0x20] sm:$0xff]  }
 0x1ed   :  { %v534_v21 = vsel %vm531_vm5, %v533_v18, %v529_v20  ;;  %v549_v35 = vsel %vm546_vm6, %v548_v47, %v544_v7  ;;  %v1744_v30 = vstv %s813_s7  ;;  %v876_v19 = vunpack.c.h.bf16 %v166_v45  ;;  %v160_v20 = vld [vmem:[%s1336_s12 + $0x18] sm:$0xff]  }
 0x1ee   :  { %v765_v25 = vmul.f32 %v1516_v3, %v534_v21  ;;  %v766_v22 = vmul.f32 %v1516_v3, %v549_v35  ;;  %v168_v3 = vld [vmem:[%s1336_s12 + $0x38] sm:$0xff]   ;;  %v875_v53 = vunpack.c.l.bf16 %v166_v45  ;;  %v871_v47 = vunpack.c.l.bf16 %v162_v15  ;;  %v156_v45 = vld [vmem:[%s1336_s12 + $0x8] sm:$0xff]  }
 0x1ef   :  { %v877_v40 = vunpack.c.l.bf16 %v168_v3  ;;  %v878_v59 = vunpack.c.h.bf16 %v168_v3  ;;  %v872_v35 = vunpack.c.h.bf16 %v162_v15 }
 0x1f0   :  { %789 = vadd.xlane.f32.xlu2 %v769_v63  ;;  %791 = vadd.xlane.f32.xlu1 %v770_v10  ;;  %v164_v63 = vld [vmem:[%s1336_s12 + $0x28] sm:$0xff]  }
 0x1f1   :  { %v873_v16 = vunpack.c.l.bf16 %v164_v63  ;;  %v874_v60 = vunpack.c.h.bf16 %v164_v63 }
 0x1f8   :  { %785 = vadd.xlane.f32.xlu2 %v767_v61  ;;  %787 = vadd.xlane.f32.xlu1 %v768_v17 }
 0x200   :  { %781 = vadd.xlane.f32.xlu2 %v765_v25  ;;  %783 = vadd.xlane.f32.xlu1 %v766_v22 }
 0x23b   :  { %v806_v24 = vpop.xlane.xlu1 %805 }
 0x23c   :  { %v827_v48 = vadd.f32 %v1744_v30, %v806_v24 }
 0x23e   :  { %v843_v46 = vpack.c.bf16 %v827_v48, %v827_v48  ;;  %v158_v48 = vld [vmem:[%s1336_s12 + $0x10] sm:$0xff]  }
 0x240   :  { %v859_v51 = vunpack.c.l.bf16 %v843_v46 }
 0x242   :  { %v891_v57 = vmul.f32 %v875_v53, %v859_v51  ;;  %v865_v53 = vunpack.c.l.bf16 %v156_v45 }
 0x243   :  { %v804_v14 = vpop.xlane.xlu1 %803  ;;  %v808_v39 = vpop.xlane.xlu2 %807 }
 0x244   :  { %v828_v31 = vadd.f32 %v1744_v30, %v808_v39  ;;  %v826_v38 = vadd.f32 %v1744_v30, %v804_v14  ;;  %v869_v39 = vunpack.c.l.bf16 %v160_v20 }
 0x246   :  { %v844_v55 = vpack.c.bf16 %v828_v31, %v828_v31  ;;  %v842_v56 = vpack.c.bf16 %v826_v38, %v826_v38  ;;  %v868_v38 = vunpack.c.h.bf16 %v158_v48 }
 0x248   :  { %v860_v50 = vunpack.c.l.bf16 %v844_v55  ;;  %v858_v12 = vunpack.c.l.bf16 %v842_v56  ;;  %v866_v56 = vunpack.c.h.bf16 %v156_v45 }
 0x24a   :  { %v892_v36 = vmul.f32 %v876_v19, %v860_v50  ;;  %v890_v21 = vmul.f32 %v874_v60, %v858_v12 }
 0x24b   :  { %v800_v27 = vpop.xlane.xlu1 %799  ;;  %v802_v28 = vpop.xlane.xlu2 %801 }
 0x24c   :  { %v810_v37 = vpop.xlane.xlu0 %809  ;;  %v825_v44 = vadd.f32 %v1744_v30, %v802_v28  ;;  %v824_v54 = vadd.f32 %v1744_v30, %v800_v27  ;;  %v901_v17 = vpack.c.bf16 %v892_v36, %v891_v57  ;;  %v870_v27 = vunpack.c.h.bf16 %v160_v20  ;;  %v154_v36 = vld [vmem:[%s1336_s12] sm:$0xff]  }
 0x24d   :  { %v829_v26 = vadd.f32 %v1744_v30, %v810_v37  ;;  %v863_v12 = vunpack.c.l.bf16 %v154_v36 }
 0x24e   :  { %v841_v6 = vpack.c.bf16 %v825_v44, %v825_v44  ;;  %v840_v42 = vpack.c.bf16 %v824_v54, %v824_v54 }
 0x24f   :  { %v845_v23 = vpack.c.bf16 %v829_v26, %v829_v26 }
 0x250   :  { %v857_v10 = vunpack.c.l.bf16 %v841_v6  ;;  %v856_v7 = vunpack.c.l.bf16 %v840_v42  ;;  %v864_v42 = vunpack.c.h.bf16 %v154_v36 }
 0x251   :  { %v861_v41 = vunpack.c.l.bf16 %v845_v23 }
 0x252   :  { %v889_v18 = vmul.f32 %v873_v16, %v857_v10  ;;  %v888_v55 = vmul.f32 %v872_v35, %v856_v7 }
 0x253   :  { %v798_v32 = vpop.xlane.xlu2 %797  ;;  %v812_v33 = vpop.xlane.xlu1 %811  ;;  %v893_v29 = vmul.f32 %v877_v40, %v861_v41 }
 0x254   :  { %v830_v34 = vadd.f32 %v1744_v30, %v812_v33  ;;  %v823_v9 = vadd.f32 %v1744_v30, %v798_v32  ;;  %v900_v26 = vpack.c.bf16 %v890_v21, %v889_v18  ;;  %v867_v33 = vunpack.c.l.bf16 %v158_v48 }
 0x256   :  { %v846_v43 = vpack.c.bf16 %v830_v34, %v830_v34  ;;  %v839_v0 = vpack.c.bf16 %v823_v9, %v823_v9 }
 0x258   :  { %v862_v1 = vunpack.c.l.bf16 %v846_v43  ;;  %v855_v61 = vunpack.c.l.bf16 %v839_v0 }
 0x25a   :  { %v894_v58 = vmul.f32 %v878_v59, %v862_v1  ;;  %v887_v31 = vmul.f32 %v871_v47, %v855_v61  ;;  %v1260_v61 = vmov 1.0|1.0  }
 0x25b   :  { %v794_v62 = vpop.xlane.xlu2 %793  ;;  %v796_v5 = vpop.xlane.xlu1 %795 }
 0x25c   :  { %v821_v49 = vadd.f32 %v1744_v30, %v794_v62  ;;  %v822_v8 = vadd.f32 %v1744_v30, %v796_v5  ;;  %v902_v11 = vpack.c.bf16 %v894_v58, %v893_v29  ;;  %v899_v40 = vpack.c.bf16 %v888_v55, %v887_v31 }
 0x25e   :  { %904 = vmatpush.bf16.msrb.mxu2 %v902_v11  ;;  %v837_v13 = vpack.c.bf16 %v821_v49, %v821_v49  ;;  %v838_v52 = vpack.c.bf16 %v822_v8, %v822_v8 }
 0x260   :  { %v853_v25 = vunpack.c.l.bf16 %v837_v13  ;;  %v854_v22 = vunpack.c.l.bf16 %v838_v52 }
 0x262   :  { %905 = vmatpush.bf16.msrb.mxu2 %v901_v17  ;;  %v885_v44 = vmul.f32 %v869_v39, %v853_v25  ;;  %v886_v32 = vmul.f32 %v870_v27, %v854_v22 }
 0x263   :  { %v790_v24 = vpop.xlane.xlu2 %789  ;;  %v792_v14 = vpop.xlane.xlu1 %791 }
 0x264   :  { %v819_v28 = vadd.f32 %v1744_v30, %v790_v24  ;;  %v820_v37 = vadd.f32 %v1744_v30, %v792_v14  ;;  %v898_v59 = vpack.c.bf16 %v886_v32, %v885_v44 }
 0x266   :  { %v835_v23 = vpack.c.bf16 %v819_v28, %v819_v28  ;;  %v836_v3 = vpack.c.bf16 %v820_v37, %v820_v37  ;;  %906 = vmatpush.bf16.msrb.mxu2 %v900_v26 }
 0x268   :  { %v851_v34 = vunpack.c.l.bf16 %v835_v23  ;;  %v852_v46 = vunpack.c.l.bf16 %v836_v3 }
 0x26a   :  { %907 = vmatpush.bf16.msrb.mxu2 %v899_v40  ;;  %v883_v19 = vmul.f32 %v867_v33, %v851_v34  ;;  %v884_v9 = vmul.f32 %v868_v38, %v852_v46 }
 0x26b   :  { %v786_v41 = vpop.xlane.xlu2 %785  ;;  %v788_v43 = vpop.xlane.xlu1 %787 }
 0x26c   :  { %v817_v50 = vadd.f32 %v1744_v30, %v786_v41  ;;  %v818_v6 = vadd.f32 %v1744_v30, %v788_v43  ;;  %v897_v58 = vpack.c.bf16 %v884_v9, %v883_v19 }
 0x26e   :  { %v833_v1 = vpack.c.bf16 %v817_v50, %v817_v50  ;;  %v834_v51 = vpack.c.bf16 %v818_v6, %v818_v6  ;;  %908 = vmatpush.bf16.msrb.mxu2 %v898_v59 }
 0x270   :  { %v849_v54 = vunpack.c.l.bf16 %v833_v1  ;;  %v850_v29 = vunpack.c.l.bf16 %v834_v51 }
 0x272   :  { %909 = vmatpush.bf16.msrb.mxu2 %v897_v58  ;;  %v881_v63 = vmul.f32 %v865_v53, %v849_v54  ;;  %v882_v10 = vmul.f32 %v866_v56, %v850_v29 }
 0x273   :  { %v782_v62 = vpop.xlane.xlu2 %781  ;;  %v784_v5 = vpop.xlane.xlu1 %783 }
 0x274   :  { %v815_v16 = vadd.f32 %v1744_v30, %v782_v62  ;;  %v816_v0 = vadd.f32 %v1744_v30, %v784_v5  ;;  %v896_v49 = vpack.c.bf16 %v882_v10, %v881_v63  ;;  %v903_v30 = vld [vmem:[#allocation2] sm:$0xff] }
 0x276   :  { %v831_v8 = vpack.c.bf16 %v815_v16, %v815_v16  ;;  %v832_v11 = vpack.c.bf16 %v816_v0, %v816_v0  ;;  %910 = vmatpush.bf16.msrb.mxu2 %v896_v49 }
 0x278   :  { %v847_v57 = vunpack.c.l.bf16 %v831_v8  ;;  %v848_v60 = vunpack.c.l.bf16 %v832_v11 }
 0x27a   :  { %v879_v13 = vmul.f32 %v863_v12, %v847_v57  ;;  %v880_v52 = vmul.f32 %v864_v42, %v848_v60 }
 0x27c   :  { %v895_v15 = vpack.c.bf16 %v880_v52, %v879_v13 }
 0x27e   :  { %911 = vmatpush.bf16.msrb.mxu2 %v895_v15 }
 0x281   :  { %1115 = vmatmul.msk.bf16.vlgmr.msrb.gmra.mxu2 %vm1114_vm7, %v1260_v61 }
 0x304   :  { %v913_v17 = vpop.f32.mrf.mxu2 }
 0x305   :  { %v917_v18 = vadd.f32 %v913_v17, %v903_v30 }
 0x307   :  { %918 = vst [vmem:[#allocation2] sm:$0xff] %v917_v18 }
 0x30c   :  { %v915_v47 = vpop.f32.mrf.mxu2 }
 0x30d PF:  { %v1177_v20 = vld [vmem:[%s1810_s9 + $0x38] sm:$0xff]  ;;  %v1176_v2 = vld [vmem:[%s1810_s9 + $0x30] sm:$0xff]  ;;  %v1175_v4 = vld [vmem:[%s1810_s9 + $0x28] sm:$0xff] }
 0x30e   :  { %989 = vmatpush.bf16.msra.mxu0 %v1177_v20  ;;  %v1174_v7 = vld [vmem:[%s1810_s9 + $0x20] sm:$0xff]  ;;  %v1173_v21 = vld [vmem:[%s1810_s9 + $0x18] sm:$0xff]  ;;  %v1172_v35 = vld [vmem:[%s1810_s9 + $0x10] sm:$0xff] }
 0x30f   :  { %v1171_v25 = vld [vmem:[%s1810_s9 + $0x8] sm:$0xff]  ;;  %v1170_v22 = vld [vmem:[%s1810_s9] sm:$0xff] }
 0x310   :  { %v923_v24 = vld [vmem:[#allocation2] sm:$0xff] }
 0x311   :  { %v924_v14 = vpack.c.bf16 %v923_v24, %v923_v24  ;;  %v922_v39 = vld [vmem:[%s1811_s10] sm:$0xff] }
 0x312   :  { %990 = vmatpush.bf16.msra.mxu0 %v1176_v2 }
 0x316   :  { %991 = vmatpush.bf16.msra.mxu0 %v1175_v4 }
 0x31a   :  { %992 = vmatpush.bf16.msra.mxu0 %v1174_v7 }
 0x31e   :  { %993 = vmatpush.bf16.msra.mxu0 %v1173_v21 }
 0x322   :  { %994 = vmatpush.bf16.msra.mxu0 %v1172_v35 }
 0x326   :  { %995 = vmatpush.bf16.msra.mxu0 %v1171_v25 }
 0x32a   :  { %996 = vmatpush.bf16.msra.mxu0 %v1170_v22 }
 0x32d   :  { %997 = vmatmul.bf16.vlgmr.msra.gmra.mxu0 %v924_v14 }
 0x3aa   :  { %v998_v27 = vpop.f32.mrf.mxu0 }
 0x3ab   :  { %v1002_v28 = vadd.f32 %v998_v27, %v922_v39 }
 0x3ad   :  { %1003 = vst [vmem:[%s1812_s11] sm:$0xff] %v1002_v28 }
 0x3b2   :  { %v1000_v37 = vpop.f32.mrf.mxu0 }

</bundles_post_ra>
